<compile_context>
chip_gen: v7x
topology: tpu7x:2x2x1
jax: 0.10.0
libtpu: 0.0.40
codegen_flags: <defaults>
</compile_context>

<pallas_src>
import jax
import jax.numpy as jnp
from jax import lax
from jax.experimental import pallas as pl
from jax.experimental.pallas import tpu as pltpu

LANES = 128
SUBLANES = 8
TARGET_TILE_BYTES = 4 * 1024 * 1024   # ~4 MiB per input tile per grid step
VMEM_LIMIT_BYTES = 32 * 1024 * 1024   # 2 inputs x 2 buffers x 4 MiB = 16 MiB + slack


def _cdiv(a, b):
    return -(-a // b)


def _make_kernel(row_tile, tiles_per_split, rows, need_mask, mask_start_tile):
    """Build the squared-difference partial-sum kernel (all closures are Python ints)."""

    def kernel(pred_ref, tgt_ref, out_ref):
        # pred_ref / tgt_ref : (row_tile, 128) tiles in the input dtype
        # out_ref            : (8, 128) f32 partial-sum accumulator per split,
        #                      resident across the inner ("arbitrary") axis.
        p = pl.program_id(0)
        r = pl.program_id(1)

        @pl.when(r == 0)
        def _():
            out_ref[...] = jnp.zeros_like(out_ref)

        def accumulate(apply_mask):
            diff = pred_ref[...].astype(jnp.float32) - tgt_ref[...].astype(jnp.float32)
            sq = diff * diff
            if apply_mask:
                # Mask rows beyond the true row count (partial edge tile and/or
                # phantom tile from the 2-way split).  `rows` is a Python int.
                g = p * tiles_per_split + r
                row_idx = g * row_tile + lax.broadcasted_iota(
                    jnp.int32, (row_tile, LANES), 0)
                sq = jnp.where(row_idx < rows, sq, 0.0)
            # Layout-free fold of the row tile into one vreg-shaped (8, 128)
            # partial: pure VPU adds, no XLU in the steady state.
            out_ref[...] += jnp.sum(sq.reshape(-1, SUBLANES, LANES), axis=0)

        if need_mask:
            g = p * tiles_per_split + r

            @pl.when(g >= mask_start_tile)
            def _():
                accumulate(True)

            @pl.when(g < mask_start_tile)
            def _():
                accumulate(False)
        else:
            accumulate(False)

    return kernel


def _bulk_sq_diff_sum(pred_slab, tgt_slab, rows, itemsize):
    """Sum of squared differences over a (rows, 128) slab via a Pallas kernel."""
    # Dtype-aware tile sizing by bytes; always a multiple of 8 sublanes.
    target_rows = max(
        SUBLANES, (TARGET_TILE_BYTES // (LANES * itemsize)) // SUBLANES * SUBLANES)
    row_tile = min(target_rows, (rows // SUBLANES) * SUBLANES)

    n_tiles = _cdiv(rows, row_tile)
    splits = 2 if n_tiles >= 2 else 1         # lets v7x's two TCs split the HBM stream
    tiles_per_split = _cdiv(n_tiles, splits)

    has_partial = (rows % row_tile) != 0
    has_phantom = splits * tiles_per_split != n_tiles
    need_mask = has_partial or has_phantom
    mask_start_tile = (n_tiles - 1) if has_partial else n_tiles

    if has_phantom:
        # Clamp the phantom tile's block index to the last real tile; its
        # contribution is fully masked out inside the kernel.
        def in_index_map(p, r):
            return (jnp.minimum(p * tiles_per_split + r, n_tiles - 1), 0)
    else:
        def in_index_map(p, r):
            return (p * tiles_per_split + r, 0)

    kernel = _make_kernel(row_tile, tiles_per_split, rows, need_mask, mask_start_tile)

    out_bytes = splits * SUBLANES * LANES * 4
    cost = pl.CostEstimate(
        flops=3 * rows * LANES,
        transcendentals=0,
        bytes_accessed=rows * LANES * (pred_slab.dtype.itemsize
                                       + tgt_slab.dtype.itemsize) + out_bytes,
    )

    partial = pl.pallas_call(
        kernel,
        out_shape=jax.ShapeDtypeStruct((splits * SUBLANES, LANES), jnp.float32),
        grid_spec=pltpu.PrefetchScalarGridSpec(
            num_scalar_prefetch=0,
            grid=(splits, tiles_per_split),
            in_specs=[
                pl.BlockSpec((row_tile, LANES), in_index_map),
                pl.BlockSpec((row_tile, LANES), in_index_map),
            ],
            out_specs=pl.BlockSpec((SUBLANES, LANES), lambda p, r: (p, 0)),
        ),
        compiler_params=pltpu.CompilerParams(
            dimension_semantics=("parallel", "arbitrary"),
            vmem_limit_bytes=VMEM_LIMIT_BYTES,
        ),
        cost_estimate=cost,
    )(pred_slab, tgt_slab)

    # Tiny final reduction (splits*8*128 floats) done in the wrapper.
    return jnp.sum(partial)


def pixel_mse_loss(preds, targets):
    """Pallas equivalent of PixelLoss(nn.MSELoss())(preds, targets)."""
    assert preds.shape == targets.shape, "PixelLoss expects same-shape tensors"
    n_elems = targets.size

    flat_p = preds.reshape(-1)    # free bitcast, original dtype stays in HBM
    flat_t = targets.reshape(-1)

    rows = n_elems // LANES
    bulk = rows * LANES
    itemsize = max(preds.dtype.itemsize, targets.dtype.itemsize)

    if rows < SUBLANES:
        # Tiny input (< 1024 elements): a kernel launch is pure overhead.
        d = flat_p.astype(jnp.float32) - flat_t.astype(jnp.float32)
        return jnp.sum(d * d) / jnp.float32(n_elems)

    tail_sum = jnp.float32(0.0)
    if bulk != n_elems:
        # TODO(synk): rare ragged lane tail (< 128 elements) is computed in
        # plain JAX; only in this case the bulk prefix slice below may
        # materialize one extra copy.
        dt = flat_p[bulk:].astype(jnp.float32) - flat_t[bulk:].astype(jnp.float32)
        tail_sum = jnp.sum(dt * dt)
        flat_p = flat_p[:bulk]
        flat_t = flat_t[:bulk]

    # Free bitcast reshape to a lane-dense (rows, 128) slab whenever
    # n_elems % 128 == 0 (the common case for image tensors).
    pred_slab = flat_p.reshape(rows, LANES)
    tgt_slab = flat_t.reshape(rows, LANES)

    bulk_sum = _bulk_sq_diff_sum(pred_slab, tgt_slab, rows, itemsize)
    return (bulk_sum + tail_sum) / jnp.float32(n_elems)


if __name__ == "__main__":
    key = jax.random.PRNGKey(0)
    k_p, k_t = jax.random.split(key)

    # NCHW, like the PyTorch module: batch=2, channels=4, spatial=16x16
    shape = (2, 4, 16, 16)
    preds = jax.random.normal(k_p, shape, dtype=jnp.float32)
    targets = jax.random.normal(k_t, shape, dtype=jnp.float32)

    loss = jax.block_until_ready(pixel_mse_loss(preds, targets))
    ref = jnp.mean((preds - targets) ** 2)
    assert jnp.allclose(loss, ref, rtol=1e-5, atol=1e-6), (loss, ref)

    # bf16 inputs stay bf16 in HBM; cast happens on the VPU inside the kernel.
    preds_bf = preds.astype(jnp.bfloat16)
    targets_bf = targets.astype(jnp.bfloat16)
    loss_bf = jax.block_until_ready(pixel_mse_loss(preds_bf, targets_bf))
    ref_bf = jnp.mean(
        (preds_bf.astype(jnp.float32) - targets_bf.astype(jnp.float32)) ** 2)
    assert jnp.allclose(loss_bf, ref_bf, rtol=1e-2, atol=1e-2), (loss_bf, ref_bf)

    # Exercises the 2-way split + masked partial edge tile path (rows=21).
    shape2 = (2, 4, 16, 21)   # 2688 elements = 21 * 128, zero-copy slab
    p2 = jax.random.normal(k_p, shape2, dtype=jnp.float32)
    t2 = jax.random.normal(k_t, shape2, dtype=jnp.float32)
    loss2 = jax.block_until_ready(pixel_mse_loss(p2, t2))
    ref2 = jnp.mean((p2 - t2) ** 2)
    assert jnp.allclose(loss2, ref2, rtol=1e-5, atol=1e-6), (loss2, ref2)

    # Exercises the ragged lane-tail path (n % 128 != 0).
    shape3 = (2, 5, 13, 16)   # 2080 elements = 16*128 + 32
    p3 = jax.random.normal(k_p, shape3, dtype=jnp.float32)
    t3 = jax.random.normal(k_t, shape3, dtype=jnp.float32)
    loss3 = jax.block_until_ready(pixel_mse_loss(p3, t3))
    ref3 = jnp.mean((p3 - t3) ** 2)
    assert jnp.allclose(loss3, ref3, rtol=1e-5, atol=1e-6), (loss3, ref3)

    print("KERNEL_OK")
</pallas_src>

<mosaic_0001>
module attributes {stable_mosaic.version = 11 : i64} {
  func.func @kernel(%arg0: i32, %arg1: i32, %arg2: memref<16x128xf32, #tpu.memory_space<vmem>>, %arg3: memref<16x128xf32, #tpu.memory_space<vmem>>, %arg4: memref<8x128xf32, #tpu.memory_space<vmem>>) attributes {dimension_semantics = [#tpu.dimension_semantics<parallel>, #tpu.dimension_semantics<arbitrary>], iteration_bounds = array<i64: 1, 1>, scalar_prefetch = 0 : i64, scratch_operands = 0 : i64, tpu.core_type = #tpu.core_type<tc>, window_params = [{transform_indices = @transform_0, window_bounds = array<i64: 16, 128>}, {transform_indices = @transform_1, window_bounds = array<i64: 16, 128>}, {transform_indices = @transform_2, window_bounds = array<i64: 8, 128>}]} {
    %c0_i32 = arith.constant 0 : i32
    %0 = arith.cmpi eq, %arg1, %c0_i32 : i32
    %1 = arith.extui %0 : i1 to i32
    %c0_i32_0 = arith.constant 0 : i32
    %2 = arith.cmpi ne, %1, %c0_i32_0 : i32
    scf.if %2 {
      %cst_8 = arith.constant 0.000000e+00 : f32
      %12 = vector.broadcast %cst_8 : f32 to vector<8x128xf32>
      %c0_9 = arith.constant 0 : index
      %c0_10 = arith.constant 0 : index
      %13 = vector.load %arg4[%c0_9, %c0_10] : memref<8x128xf32, #tpu.memory_space<vmem>>, vector<8x128xf32>
      tpu.vector_store %arg4[%c0_9, %c0_10], %12 {strides = array<i32>} : memref<8x128xf32, #tpu.memory_space<vmem>>, vector<8x128xf32>,
    } else {
    }
    %c0 = arith.constant 0 : index
    %c0_1 = arith.constant 0 : index
    %3 = vector.load %arg2[%c0, %c0_1] : memref<16x128xf32, #tpu.memory_space<vmem>>, vector<16x128xf32>
    %c0_2 = arith.constant 0 : index
    %c0_3 = arith.constant 0 : index
    %4 = vector.load %arg3[%c0_2, %c0_3] : memref<16x128xf32, #tpu.memory_space<vmem>>, vector<16x128xf32>
    %5 = arith.subf %3, %4 : vector<16x128xf32>
    %6 = arith.mulf %5, %5 : vector<16x128xf32>
    %c0_4 = arith.constant 0 : index
    %c0_5 = arith.constant 0 : index
    %7 = vector.load %arg4[%c0_4, %c0_5] : memref<8x128xf32, #tpu.memory_space<vmem>>, vector<8x128xf32>
    %8 = vector.shape_cast %6 : vector<16x128xf32> to vector<2x8x128xf32>
    %cst = arith.constant dense<0.000000e+00> : vector<8x128xf32>
    %9 = vector.multi_reduction <add>, %8, %cst [0] : vector<2x8x128xf32> to vector<8x128xf32>
    %10 = arith.addf %7, %9 : vector<8x128xf32>
    %c0_6 = arith.constant 0 : index
    %c0_7 = arith.constant 0 : index
    %11 = vector.load %arg4[%c0_6, %c0_7] : memref<8x128xf32, #tpu.memory_space<vmem>>, vector<8x128xf32>
    tpu.vector_store %arg4[%c0_6, %c0_7], %10 {strides = array<i32>} : memref<8x128xf32, #tpu.memory_space<vmem>>, vector<8x128xf32>,
    return
  }
  func.func @transform_0(%arg0: i32, %arg1: i32) -> (i32, i32) {
    %c1_i32 = arith.constant 1 : i32
    %0 = arith.muli %arg0, %c1_i32 : i32
    %1 = arith.addi %0, %arg1 : i32
    %c0_i32 = arith.constant 0 : i32
    %c0_i32_0 = arith.constant 0 : i32
    return %1, %c0_i32 : i32, i32
  }
  func.func @transform_1(%arg0: i32, %arg1: i32) -> (i32, i32) {
    %c1_i32 = arith.constant 1 : i32
    %0 = arith.muli %arg0, %c1_i32 : i32
    %1 = arith.addi %0, %arg1 : i32
    %c0_i32 = arith.constant 0 : i32
    %c0_i32_0 = arith.constant 0 : i32
    return %1, %c0_i32 : i32, i32
  }
  func.func @transform_2(%arg0: i32, %arg1: i32) -> (i32, i32) {
    %c0_i32 = arith.constant 0 : i32
    %c0_i32_0 = arith.constant 0 : i32
    return %arg0, %c0_i32 : i32, i32
  }
}

</mosaic_0001>

<bundles_post_ra>
// kernel: tpu_custom_call.1
= control target key start
LH: loop header
LB: loop body
LE: loop exit
PB: predicated region body
PF: predicated region fallthrough
CT: control target
= control target key end

     0   :  { %7 = vsyncpa [#allocation3], 0  ;;  %s219_s0 = inlined_call_operand.hbm [shape: f32[16,128], index: 0, kind: input, shape index: {}]   ;;  %s220_s1 = inlined_call_operand.hbm [shape: f32[16,128], index: 1, kind: input, shape index: {}]   ;;  %s221_s2 = inlined_call_operand.hbm [shape: f32[8,128], index: 2, kind: output, shape index: {}]  }
   0x1   :  { %8 = vsyncpa [#allocation6], 0 }
   0x2   :  { %9 = vsyncpa [#allocation4], 0  ;;  %s163_s9 = smov [#allocation2]   ;;  %s91_s13 = scalar_lea.hbm %s219_s0, 256 }
   0x3   :  { %s19_s10 = sshll.u32 %s163_s9, 4  ;;  %p92_p0 = scmp.ne.s32.totalorder %s219_s0, %s91_s13  ;;  %s20_s10 = int_to_ptr.vmem [resolvable:$true] %s19_s10 }
   0x4   :  { %p95_p1 = scmp.lt.u32.totalorder %s91_s13, %s219_s0 }
   0x6   :  { %p97_p2 = pnand %p95_p1, %p92_p0 }
   0x8   :  { %100 = shalt.err (!%p97_p2)
}
   0x9   :  { %s101_s18 = scalar_lea.vmem %s20_s10, 256  ;;  %p106_p4 = scmp.lt.s32.totalorder %s20_s10, %s20_s10 }
   0xa   :  { %p102_p3 = scmp.ne.s32.totalorder %s20_s10, %s101_s18  ;;  %p107_p5 = scmp.lt.s32.totalorder %s101_s18, %s101_s18 }
   0xc   :  { %p108_p6 = por %p107_p5, %p106_p4 }
   0xe   :  { %p109_p7 = pnand %p108_p6, %p102_p3 }
  0x10   :  { %112 = shalt.err (!%p109_p7)
}
  0x11   :  { %s164_s19 = smov 128   ;;  %s165_s20 = smov 8  }
  0x12   :  { %25 = dma.hbm_to_vmem [thread:$0]  %s219_s0, 256, %s20_s10, [#allocation3], %s164_s19, %s164_s19, %s165_s20  }
  0x13   :  { %s166_s23 = smov [#allocation5]   ;;  %s113_s27 = scalar_lea.hbm %s220_s1, 256 }
  0x14   :  { %s35_s24 = sshll.u32 %s166_s23, 4  ;;  %p114_p8 = scmp.ne.s32.totalorder %s220_s1, %s113_s27  ;;  %s36_s24 = int_to_ptr.vmem [resolvable:$true] %s35_s24 }
  0x15   :  { %p117_p9 = scmp.lt.u32.totalorder %s113_s27, %s220_s1 }
  0x17   :  { %p119_p10 = pnand %p117_p9, %p114_p8 }
  0x19   :  { %122 = shalt.err (!%p119_p10)
}
  0x1a   :  { %s123_s4 = scalar_lea.vmem %s36_s24, 256  ;;  %p128_p12 = scmp.lt.s32.totalorder %s36_s24, %s36_s24 }
  0x1b   :  { %p124_p11 = scmp.ne.s32.totalorder %s36_s24, %s123_s4  ;;  %p129_p13 = scmp.lt.s32.totalorder %s123_s4, %s123_s4 }
  0x1d   :  { %p130_p0 = por %p129_p13, %p128_p12 }
  0x1f   :  { %p131_p1 = pnand %p130_p0, %p124_p11 }
  0x21   :  { %134 = shalt.err (!%p131_p1)
}
  0x22   :  { %41 = dma.hbm_to_vmem [thread:$0]  %s220_s1, 256, %s36_s24, [#allocation6], %s164_s19, %s164_s19, %s165_s20  }
  0x23   :  { %157 = dma.done.wait [#allocation3], 256  }
  0x24   :  { %158 = vsyncadd [#allocation3], 4294967040 }
  0x25   :  { %159 = dma.done.wait [#allocation6], 256  }
  0x26   :  { %160 = vsyncadd [#allocation6], 4294967040  ;;  %v57_v0 = vld [vmem:[#allocation2] sm:$0xff]  ;;  %v58_v1 = vld [vmem:[#allocation2 + $0x8] sm:$0xff]  ;;  %s167_s6 = smov [#allocation7]  }
  0x27   :  { %v59_v2 = vld [vmem:[#allocation5] sm:$0xff]  ;;  %v60_v3 = vld [vmem:[#allocation5 + $0x8] sm:$0xff]  ;;  %s75_s7 = sshll.u32 %s167_s6, 4  ;;  %s76_s7 = int_to_ptr.vmem [resolvable:$true] %s75_s7 }
  0x28   :  { %v61_v4 = vsub.f32 %v57_v0, %v59_v2  ;;  %v62_v5 = vsub.f32 %v58_v1, %v60_v3  ;;  %s135_s8 = scalar_lea.vmem %s76_s7, 128  ;;  %p140_p3 = scmp.lt.s32.totalorder %s76_s7, %s76_s7 }
  0x29   :  { %p136_p2 = scmp.ne.s32.totalorder %s76_s7, %s135_s8  ;;  %p141_p4 = scmp.lt.s32.totalorder %s135_s8, %s135_s8 }
  0x2a   :  { %v63_v6 = vmul.f32 %v61_v4, %v61_v4  ;;  %v64_v7 = vmul.f32 %v62_v5, %v62_v5 }
  0x2b   :  { %p142_p5 = por %p141_p4, %p140_p3 }
  0x2c   :  { %v66_v8 = vadd.f32 %v64_v7, %v63_v6 }
  0x2d   :  { %p143_p6 = pnand %p142_p5, %p136_p2 }
  0x2e   :  { %68 = vst [vmem:[#allocation7] sm:$0xff] %v66_v8 }
  0x2f   :  { %146 = shalt.err (!%p143_p6)
}
  0x30   :  { %s147_s10 = scalar_lea.hbm %s221_s2, 128 }
  0x31   :  { %p148_p7 = scmp.ne.s32.totalorder %s221_s2, %s147_s10  ;;  %p151_p8 = scmp.lt.u32.totalorder %s147_s10, %s221_s2 }
  0x33   :  { %p153_p9 = pnand %p151_p8, %p148_p7 }
  0x35   :  { %156 = shalt.err (!%p153_p9)
}
  0x36   :  { %78 = dma.vmem_to_hbm [thread:$0]  %s76_s7, 128, %s221_s2, [#allocation4]  }
  0x37   :  { %161 = dma.done.wait [#allocation4], 128  }
  0x38   :  { %162 = vsyncadd [#allocation4], 4294967168 }
  0x39   :  { %82 = vsyncpa [#allocation3], 1 }
  0x3a   :  { %83 = vsyncpa [#allocation6], 1 }
  0x3b   :  { %84 = vsyncpa [#allocation4], 1 }

</bundles_post_ra>
